<compile_context>
chip_gen: v7x
topology: tpu7x:2x2x1
jax: 0.10.0
libtpu: 0.0.40
codegen_flags: <defaults>
</compile_context>

<pallas_src>
import functools

import jax
import jax.numpy as jnp
from jax.experimental import pallas as pl
from jax.experimental.pallas import tpu as pltpu


def _round_up(x, m):
    return (x + m - 1) // m * m


def _critic_kernel(feat_ref, w1_ref, w2_ref, wd_ref, out_ref, *,
                   norm_feature, batch, block_b, needs_mask):
    # feat_ref: (TB, F) f32; w1_ref: (F, HP) bf16; w2_ref: (HP, HP) bf16;
    # wd_ref: (1, HP) bf16; out_ref: (1, 1, TB) f32.
    x = feat_ref[...].astype(jnp.float32)                      # (TB, F)

    if needs_mask:
        # Ragged last tile: rows past `batch` contain garbage from the
        # padded DMA.  Replace them with ones so the normalization stays
        # finite; they are sliced off in the wrapper.
        rows = (pl.program_id(0) * block_b
                + jax.lax.broadcasted_iota(jnp.int32, (block_b, 1), 0))
        x = jnp.where(rows < batch, x, 1.0)

    if norm_feature:
        s = jnp.sum(x, axis=-1, keepdims=True)                 # (TB, 1) f32
        x = x * pl.reciprocal(s, approx=True)                  # EUP reciprocal

    h = jnp.dot(x.astype(jnp.bfloat16), w1_ref[...],
                preferred_element_type=jnp.float32)            # (TB, HP)
    h = jnp.maximum(h, 0.0)
    h = jnp.dot(h.astype(jnp.bfloat16), w2_ref[...],
                preferred_element_type=jnp.float32)            # (TB, HP)
    h = jnp.maximum(h, 0.0)

    # Decoder (HP -> 1) computed in the transposed orientation so the tile's
    # output is a lane-dense (1, TB) row instead of a (TB, 1) column.
    logit = jnp.dot(wd_ref[...], h.astype(jnp.bfloat16).T,
                    preferred_element_type=jnp.float32)        # (1, TB)
    out_ref[...] = logit.reshape(out_ref.shape)


def _choose_block_b(batch, num_feature, hidden_padded):
    """Pick the batch-tile size TB."""
    # Keep the widest per-row f32 buffer (feature row or hidden row) around
    # <= ~2 MiB per tile so everything double-buffers comfortably in VMEM on
    # v7x (64 MiB) as well as v5e/v6e (128 MiB).
    row_bytes = 4 * max(num_feature, hidden_padded)
    cap = max(8, ((2 << 20) // row_bytes) // 8 * 8)
    if batch <= min(256, cap):
        return batch                          # single exact tile (block == array)
    if batch <= 4096:
        tb = _round_up(-(-batch // 2), 8)     # 2 tiles -> both v7x TensorCores
    else:
        tb = 1024                             # large tiles, grid >= 5
    return max(8, min(tb, cap))


def _critic_reference(feature, params, norm_feature):
    """Pure-jnp forward (also used as the small-batch fallback)."""
    w1_t, w2_t, wd_t = params
    x = feature.astype(jnp.float32)
    if norm_feature:
        x = x / jnp.sum(x, axis=-1, keepdims=True)
    h = jnp.maximum(x @ w1_t, 0.0)
    h = jnp.maximum(h @ w2_t, 0.0)
    return h @ wd_t


def _critic_pallas(feature, params, norm_feature):
    w1_t, w2_t, wd_t = params
    batch, num_feature = feature.shape
    hidden = w1_t.shape[1]
    hp = _round_up(hidden, 128)

    # Zero-pad the tiny, VMEM-resident weights so the MXU sees full-lane
    # operands; numerically exact (zero columns give zero contributions).
    # TODO(synk): in a real model, do this padding once at init, not per call.
    w1p = jnp.pad(w1_t, ((0, 0), (0, hp - hidden))).astype(jnp.bfloat16)
    w2p = jnp.pad(w2_t, ((0, hp - hidden), (0, hp - hidden))).astype(jnp.bfloat16)
    wdp = jnp.pad(wd_t.reshape(1, hidden),
                  ((0, 0), (0, hp - hidden))).astype(jnp.bfloat16)

    tb = _choose_block_b(batch, num_feature, hp)
    num_tiles = -(-batch // tb)
    needs_mask = (batch % tb) != 0

    # VMEM budget: double-buffered feature/output tiles + resident weights
    # + in-kernel intermediates, with headroom; clamped well under v7x's
    # 64 MiB physical VMEM.
    feat_tile = tb * num_feature * 4
    inter = tb * hp * 4 * 4 + tb * num_feature * 6 + tb * 8
    weights = (num_feature * hp + hp * hp + hp) * 2
    vmem_bytes = 2 * (feat_tile + tb * 4) + weights + inter
    vmem_limit = int(min(max(2 * vmem_bytes, 16 << 20), 40 << 20))

    kernel = functools.partial(
        _critic_kernel, norm_feature=norm_feature, batch=batch,
        block_b=tb, needs_mask=needs_mask)

    out = pl.pallas_call(
        kernel,
        out_shape=jax.ShapeDtypeStruct((num_tiles, 1, tb), jnp.float32),
        grid=(num_tiles,),
        in_specs=[
            pl.BlockSpec((tb, num_feature), lambda i: (i, 0)),
            pl.BlockSpec((num_feature, hp), lambda i: (0, 0)),   # resident W1
            pl.BlockSpec((hp, hp), lambda i: (0, 0)),            # resident W2
            pl.BlockSpec((1, hp), lambda i: (0, 0)),             # resident Wd
        ],
        out_specs=pl.BlockSpec((1, 1, tb), lambda i: (i, 0, 0)),
        compiler_params=pltpu.CompilerParams(
            dimension_semantics=("parallel",),
            vmem_limit_bytes=vmem_limit,
        ),
    )(feature, w1p, w2p, wdp)

    # Lane-dense per-tile rows -> (batch, 1) column (layout plumbing only).
    return out.reshape(num_tiles * tb)[:batch].reshape(batch, 1)


def critic_forward(feature_tuple, params, *, norm_feature, min_pallas_batch=1024):
    """JAX wrapper matching Critic.forward semantics.

    feature_tuple = (feature, existed_src); existed_src is ignored, exactly
    as in the PyTorch module.
    params = (w1_t, w2_t, wd_t) with shapes (F, H), (H, H), (H, 1)
    (the PyTorch Linear weights pre-transposed).
    """
    feature, _existed_src = feature_tuple          # existed_src unused
    batch = feature.shape[0]
    if batch < min_pallas_batch:
        # Tiny batches: pallas_call fixed cost dwarfs the math; let XLA fuse.
        return _critic_reference(feature, params, norm_feature)
    return _critic_pallas(feature, params, norm_feature)


def init_critic_params(key, num_feature, hidden_size, critic_init_range):
    """Deterministic uniform(-r, r) init matching the PyTorch __init__."""
    k1, k2, k3 = jax.random.split(key, 3)
    r = critic_init_range
    # PyTorch Linear stores (out, in); we keep the transposed (in, out) layout.
    w1_t = jax.random.uniform(k1, (num_feature, hidden_size), jnp.float32, -r, r)
    w2_t = jax.random.uniform(k2, (hidden_size, hidden_size), jnp.float32, -r, r)
    wd_t = jax.random.uniform(k3, (hidden_size, 1), jnp.float32, -r, r)
    return w1_t, w2_t, wd_t


if __name__ == "__main__":
    # hparams analogue
    num_feature = 32          # Model-level note: F/H are hparams of the reference
    d_hidden_critic = 32      # module; the kernel zero-pads H to 128 internally
    critic_init_range = 0.1   # (exact) so the MXU runs at full lane width.
    norm_feature = True

    key = jax.random.PRNGKey(0)
    k_feat_a, k_feat_b, k_param = jax.random.split(key, 3)

    params = init_critic_params(
        k_param, num_feature, d_hidden_critic, critic_init_range
    )

    # Two cases: a tiny single-tile batch and a multi-tile ragged batch
    # (exercises masking of the padded last block + the 2-tile v7x split).
    for batch, k_feat in ((8, k_feat_a), (300, k_feat_b)):
        # Positive features so the row-sum normalization is well-behaved.
        feature = jax.random.uniform(
            k_feat, (batch, num_feature), jnp.float32, 0.1, 1.0
        )
        existed_src = jnp.zeros((batch,), jnp.int32)  # unused, mirrors the tuple

        # Force the Pallas path (min_pallas_batch=0) so the kernel is exercised.
        logit = critic_forward((feature, existed_src), params,
                               norm_feature=norm_feature, min_pallas_batch=0)
        logit = jax.block_until_ready(logit)

        ref = _critic_reference(feature, params, norm_feature)
        assert logit.shape == (batch, 1)
        # bf16 MXU inputs + approx reciprocal => loose tolerance vs f32 reference.
        assert jnp.allclose(logit, ref, atol=1e-3, rtol=5e-2), (
            f"batch={batch}: max abs err {jnp.max(jnp.abs(logit - ref))}")

    print("KERNEL_OK")
</pallas_src>

<mosaic_0001>
module attributes {stable_mosaic.version = 11 : i64} {
  func.func @_critic_kernel(%arg0: i32, %arg1: memref<8x32xf32, #tpu.memory_space<vmem>>, %arg2: memref<32x128xbf16, #tpu.memory_space<vmem>>, %arg3: memref<128x128xbf16, #tpu.memory_space<vmem>>, %arg4: memref<1x128xbf16, #tpu.memory_space<vmem>>, %arg5: memref<1x1x8xf32, #tpu.memory_space<vmem>>) attributes {dimension_semantics = [#tpu.dimension_semantics<parallel>], iteration_bounds = array<i64: 1>, scalar_prefetch = 0 : i64, scratch_operands = 0 : i64, tpu.core_type = #tpu.core_type<tc>, window_params = [{transform_indices = @transform_0, window_bounds = array<i64: 8, 32>}, {pipeline_mode = #tpu.pipeline_mode<synchronous>, transform_indices = @transform_1, window_bounds = array<i64: 32, 128>}, {pipeline_mode = #tpu.pipeline_mode<synchronous>, transform_indices = @transform_2, window_bounds = array<i64: 128, 128>}, {pipeline_mode = #tpu.pipeline_mode<synchronous>, transform_indices = @transform_3, window_bounds = array<i64: 1, 128>}, {transform_indices = @transform_4, window_bounds = array<i64: 1, 1, 8>}]} {
    %c0 = arith.constant 0 : index
    %c0_0 = arith.constant 0 : index
    %0 = vector.load %arg1[%c0, %c0_0] : memref<8x32xf32, #tpu.memory_space<vmem>>, vector<8x32xf32>
    %cst = arith.constant dense<0.000000e+00> : vector<8xf32>
    %1 = vector.multi_reduction <add>, %0, %cst [1] : vector<8x32xf32> to vector<8xf32>
    %2 = vector.shape_cast %1 : vector<8xf32> to vector<8x1xf32>
    %3 = tpu.reciprocal %2 {approx = true} : vector<8x1xf32> -> vector<8x1xf32>
    %4 = vector.broadcast %3 : vector<8x1xf32> to vector<8x32xf32>
    %5 = arith.mulf %0, %4 : vector<8x32xf32>
    %6 = arith.truncf %5 : vector<8x32xf32> to vector<8x32xbf16>
    %c0_1 = arith.constant 0 : index
    %c0_2 = arith.constant 0 : index
    %7 = vector.load %arg2[%c0_1, %c0_2] : memref<32x128xbf16, #tpu.memory_space<vmem>>, vector<32x128xbf16>
    %cst_3 = arith.constant dense<0.000000e+00> : vector<8x128xf32>
    %8 = tpu.matmul %6, %7, %cst_3 {dimension_numbers = #tpu.dot_dimension_numbers<[1], [0], [0], [1], [0, 0, 1, 1], [], []>} : vector<8x32xbf16>, vector<32x128xbf16>, vector<8x128xf32> -> vector<8x128xf32>
    %cst_4 = arith.constant 0.000000e+00 : f32
    %9 = vector.broadcast %cst_4 : f32 to vector<8x128xf32>
    %10 = arith.maximumf %8, %9 : vector<8x128xf32>
    %11 = arith.truncf %10 : vector<8x128xf32> to vector<8x128xbf16>
    %c0_5 = arith.constant 0 : index
    %c0_6 = arith.constant 0 : index
    %12 = vector.load %arg3[%c0_5, %c0_6] : memref<128x128xbf16, #tpu.memory_space<vmem>>, vector<128x128xbf16>
    %cst_7 = arith.constant dense<0.000000e+00> : vector<8x128xf32>
    %13 = tpu.matmul %11, %12, %cst_7 {dimension_numbers = #tpu.dot_dimension_numbers<[1], [0], [0], [1], [0, 0, 1, 1], [], []>} : vector<8x128xbf16>, vector<128x128xbf16>, vector<8x128xf32> -> vector<8x128xf32>
    %cst_8 = arith.constant 0.000000e+00 : f32
    %14 = vector.broadcast %cst_8 : f32 to vector<8x128xf32>
    %15 = arith.maximumf %13, %14 : vector<8x128xf32>
    %c0_9 = arith.constant 0 : index
    %c0_10 = arith.constant 0 : index
    %16 = vector.load %arg4[%c0_9, %c0_10] : memref<1x128xbf16, #tpu.memory_space<vmem>>, vector<1x128xbf16>
    %17 = arith.truncf %15 : vector<8x128xf32> to vector<8x128xbf16>
    %18 = tpu.transpose %17, [1, 0] : vector<8x128xbf16> -> vector<128x8xbf16>
    %cst_11 = arith.constant dense<0.000000e+00> : vector<1x8xf32>
    %19 = tpu.matmul %16, %18, %cst_11 {dimension_numbers = #tpu.dot_dimension_numbers<[1], [0], [0], [1], [0, 0, 1, 1], [], []>} : vector<1x128xbf16>, vector<128x8xbf16>, vector<1x8xf32> -> vector<1x8xf32>
    %20 = vector.shape_cast %19 : vector<1x8xf32> to vector<1x1x8xf32>
    %c0_12 = arith.constant 0 : index
    %c0_13 = arith.constant 0 : index
    %c0_14 = arith.constant 0 : index
    %21 = vector.load %arg5[%c0_12, %c0_13, %c0_14] : memref<1x1x8xf32, #tpu.memory_space<vmem>>, vector<1x1x8xf32>
    tpu.vector_store %arg5[%c0_12, %c0_13, %c0_14], %20 {strides = array<i32>} : memref<1x1x8xf32, #tpu.memory_space<vmem>>, vector<1x1x8xf32>,
    return
  }
  func.func @transform_0(%arg0: i32) -> (i32, i32) {
    %c0_i32 = arith.constant 0 : i32
    %c0_i32_0 = arith.constant 0 : i32
    return %arg0, %c0_i32 : i32, i32
  }
  func.func @transform_1(%arg0: i32) -> (i32, i32) {
    %c0_i32 = arith.constant 0 : i32
    %c0_i32_0 = arith.constant 0 : i32
    %c0_i32_1 = arith.constant 0 : i32
    return %c0_i32, %c0_i32_0 : i32, i32
  }
  func.func @transform_2(%arg0: i32) -> (i32, i32) {
    %c0_i32 = arith.constant 0 : i32
    %c0_i32_0 = arith.constant 0 : i32
    %c0_i32_1 = arith.constant 0 : i32
    return %c0_i32, %c0_i32_0 : i32, i32
  }
  func.func @transform_3(%arg0: i32) -> (i32, i32) {
    %c0_i32 = arith.constant 0 : i32
    %c0_i32_0 = arith.constant 0 : i32
    %c0_i32_1 = arith.constant 0 : i32
    return %c0_i32, %c0_i32_0 : i32, i32
  }
  func.func @transform_4(%arg0: i32) -> (i32, i32, i32) {
    %c0_i32 = arith.constant 0 : i32
    %c0_i32_0 = arith.constant 0 : i32
    %c0_i32_1 = arith.constant 0 : i32
    return %arg0, %c0_i32, %c0_i32_0 : i32, i32, i32
  }
}

</mosaic_0001>

<bundles_post_ra>
// kernel: tpu_custom_call.1
= control target key start
LH: loop header
LB: loop body
LE: loop exit
PB: predicated region body
PF: predicated region fallthrough
CT: control target
= control target key end

     0   :  { %9 = vsyncpa [#allocation3], 0  ;;  %s560_s0 = inlined_call_operand.hbm [shape: f32[8,32], index: 0, kind: input, shape index: {}]   ;;  %s561_s1 = inlined_call_operand.hbm [shape: bf16[32,128], index: 1, kind: input, shape index: {}]   ;;  %s562_s2 = inlined_call_operand.hbm [shape: bf16[128,128], index: 2, kind: input, shape index: {}]   ;;  %s563_s3 = inlined_call_operand.vmem [shape: bf16[1,128], index: 3, kind: input, shape index: {}]   ;;  %s564_s4 = inlined_call_operand.hbm [shape: f32[1,1,8], index: 4, kind: output, shape index: {}]  }
   0x1   :  { %10 = vsyncpa [#allocation6], 0 }
   0x2   :  { %11 = vsyncpa [#allocation4], 0  ;;  %s465_s15 = smov [#allocation5]   ;;  %s371_s19 = scalar_lea.hbm %s561_s1, 256 }
   0x3   :  { %s27_s16 = sshll.u32 %s465_s15, 4  ;;  %p372_p0 = scmp.ne.s32.totalorder %s561_s1, %s371_s19  ;;  %s28_s16 = int_to_ptr.vmem [resolvable:$true] %s27_s16 }
   0x4   :  { %p375_p1 = scmp.lt.u32.totalorder %s371_s19, %s561_s1 }
   0x6   :  { %p377_p2 = pnand %p375_p1, %p372_p0 }
   0x8   :  { %380 = shalt.err (!%p377_p2)
}
   0x9   :  { %s381_s24 = scalar_lea.vmem %s28_s16, 256  ;;  %p386_p4 = scmp.lt.s32.totalorder %s28_s16, %s28_s16 }
   0xa   :  { %p382_p3 = scmp.ne.s32.totalorder %s28_s16, %s381_s24  ;;  %p387_p5 = scmp.lt.s32.totalorder %s381_s24, %s381_s24 }
   0xc   :  { %p388_p6 = por %p387_p5, %p386_p4 }
   0xe   :  { %p389_p7 = pnand %p388_p6, %p382_p3 }
  0x10   :  { %392 = shalt.err (!%p389_p7)
}
  0x11   :  { %s466_s25 = smov 64   ;;  %s467_s26 = smov 4  }
  0x12   :  { %33 = dma.hbm_to_vmem [thread:$0]  %s561_s1, 256, %s28_s16, [#allocation6], %s466_s25, %s466_s25, %s467_s26  }
  0x13   :  { %s468_s29 = smov [#allocation2]   ;;  %s469_s5 = smov [#allocation7]  }
  0x14   :  { %s18_s30 = sshll.u32 %s468_s29, 4  ;;  %s39_s6 = sshll.u32 %s469_s5, 4  ;;  %s19_s30 = int_to_ptr.vmem [resolvable:$true] %s18_s30  ;;  %s40_s6 = int_to_ptr.vmem [resolvable:$true] %s39_s6 }
  0x15   :  { %s393_s9 = scalar_lea.hbm %s560_s0, 128 }
  0x16   :  { %p394_p8 = scmp.ne.s32.totalorder %s560_s0, %s393_s9  ;;  %p397_p9 = scmp.lt.u32.totalorder %s393_s9, %s560_s0 }
  0x18   :  { %p399_p10 = pnand %p397_p9, %p394_p8 }
  0x1a   :  { %402 = shalt.err (!%p399_p10)
}
  0x1b   :  { %s403_s1 = scalar_lea.vmem %s19_s30, 128  ;;  %p408_p12 = scmp.lt.s32.totalorder %s19_s30, %s19_s30 }
  0x1c   :  { %p404_p11 = scmp.ne.s32.totalorder %s19_s30, %s403_s1  ;;  %p409_p13 = scmp.lt.s32.totalorder %s403_s1, %s403_s1 }
  0x1e   :  { %p410_p0 = por %p409_p13, %p408_p12 }
  0x20   :  { %p411_p1 = pnand %p410_p0, %p404_p11 }
  0x22   :  { %414 = shalt.err (!%p411_p1)
}
  0x23   :  { %21 = dma.hbm_to_vmem [thread:$0]  %s560_s0, 128, %s19_s30, [#allocation3]  }
  0x24   :  { %s415_s18 = scalar_lea.hbm %s562_s2, 1024 }
  0x25   :  { %p416_p2 = scmp.ne.s32.totalorder %s562_s2, %s415_s18  ;;  %p419_p3 = scmp.lt.u32.totalorder %s415_s18, %s562_s2 }
  0x27   :  { %p421_p4 = pnand %p419_p3, %p416_p2 }
  0x29   :  { %424 = shalt.err (!%p421_p4)
}
  0x2a   :  { %s425_s23 = scalar_lea.vmem %s40_s6, 1024  ;;  %p430_p6 = scmp.lt.s32.totalorder %s40_s6, %s40_s6 }
  0x2b   :  { %p426_p5 = scmp.ne.s32.totalorder %s40_s6, %s425_s23  ;;  %p431_p7 = scmp.lt.s32.totalorder %s425_s23, %s425_s23 }
  0x2d   :  { %p432_p8 = por %p431_p7, %p430_p6 }
  0x2f   :  { %p433_p9 = pnand %p432_p8, %p426_p5 }
  0x31   :  { %436 = shalt.err (!%p433_p9)
}
  0x32   :  { %45 = dma.hbm_to_vmem [thread:$0]  %s562_s2, 1024, %s40_s6, [#allocation6], %s466_s25, %s466_s25, %s467_s26  }
  0x33   :  { %459 = dma.done.wait [#allocation3], 128  }
  0x34   :  { %460 = vsyncadd [#allocation3], 4294967168 }
  0x35   :  { %461 = dma.done.wait [#allocation6], 1280  }
  0x36   :  { %462 = vsyncadd [#allocation6], 4294966016  ;;  %vm59_vm0 = vcmask 261120   ;;  %v58_v0 = vld [vmem:[#allocation2] sm:$0xff]  ;;  %v359_v2 = vld [vmem:[#allocation5] sm:$0xff]   ;;  %v470_v3 = vmov 0.0  }
  0x37   :  { %v60_v1 = vsel %vm59_vm0, %v58_v0, 0.0  ;;  %317 = vmatprep.subr.bf16.mxu0 %v470_v3  ;;  %vm471_vm1 = vmmov 0   ;;  %v360_v4 = vld [vmem:[#allocation5 + $0x8] sm:$0xff]   ;;  %325 = vmatprep.subr.bf16.mxu1 %v470_v3  ;;  %v361_v5 = vld [vmem:[#allocation7] sm:$0xff]   ;;  %v362_v6 = vld [vmem:[#allocation7 + $0x8] sm:$0xff]   ;;  %s472_s26 = smov [#allocation8]  }
  0x38   :  { %61 = vadd.xlane.f32.xlu0 %v60_v1  ;;  %321 = vmatprep.mubr.msk.bf16.mxu0 %vm471_vm1, %v470_v3  ;;  %v363_v7 = vld [vmem:[#allocation7 + $0x10] sm:$0xff]   ;;  %v364_v8 = vld [vmem:[#allocation7 + $0x18] sm:$0xff]   ;;  %v365_v9 = vld [vmem:[#allocation7 + $0x20] sm:$0xff]   ;;  %s282_s27 = sshll.u32 %s472_s26, 4  ;;  %vm274_vm2 = vcmask 57344   ;;  %s283_s27 = int_to_ptr.vmem [resolvable:$true] %s282_s27 }
  0x39   :  { %318 = vmatpush3.bf16.msra.mxu0 %v359_v2  ;;  %341 = vmatprep.mubr.msk.bf16.mxu1 %vm471_vm1, %v470_v3  ;;  %v366_v10 = vld [vmem:[#allocation7 + $0x28] sm:$0xff]   ;;  %v367_v11 = vld [vmem:[#allocation7 + $0x30] sm:$0xff]   ;;  %v368_v16 = vld [vmem:[#allocation7 + $0x38] sm:$0xff]   ;;  %s437_s28 = scalar_lea.vmem %s283_s27, 16  ;;  %s441_s29 = scalar_lea.vmem %s283_s27, 32 }
  0x3a   :  { %319 = vmatprep.subr.bf16.mxu0 %v470_v3  ;;  %326 = vmatpush3.bf16.msra.mxu1 %v361_v5  ;;  %v232_v29 = vld [vmem:[%s563_s3] sm:$0x1]  ;;  %p438_p10 = scmp.ne.s32.totalorder %s283_s27, %s437_s28  ;;  %p442_p11 = scmp.lt.s32.totalorder %s283_s27, %s283_s27 }
  0x3b   :  { %327 = vmatprep.subr.bf16.mxu1 %v470_v3  ;;  %p443_p12 = scmp.lt.s32.totalorder %s441_s29, %s437_s28 }
  0x3d   :  { %320 = vmatpush3.bf16.msra.mxu0 %v360_v4  ;;  %p444_p13 = por %p443_p12, %p442_p11 }
  0x3e   :  { %345 = vmatprep.subr.bf16.mxu0 %v470_v3  ;;  %328 = vmatpush3.bf16.msra.mxu1 %v362_v6 }
  0x3f   :  { %329 = vmatprep.subr.bf16.mxu1 %v470_v3  ;;  %p445_p0 = pnand %p444_p13, %p438_p10 }
  0x42   :  { %330 = vmatpush3.bf16.msra.mxu1 %v363_v7 }
  0x43   :  { %331 = vmatprep.subr.bf16.mxu1 %v470_v3 }
  0x46   :  { %332 = vmatpush3.bf16.msra.mxu1 %v364_v8 }
  0x47   :  { %333 = vmatprep.subr.bf16.mxu1 %v470_v3 }
  0x4a   :  { %334 = vmatpush3.bf16.msra.mxu1 %v365_v9 }
  0x4b   :  { %335 = vmatprep.subr.bf16.mxu1 %v470_v3 }
  0x4e   :  { %336 = vmatpush3.bf16.msra.mxu1 %v366_v10 }
  0x4f   :  { %337 = vmatprep.subr.bf16.mxu1 %v470_v3 }
  0x52   :  { %338 = vmatpush3.bf16.msra.mxu1 %v367_v11 }
  0x53   :  { %339 = vmatprep.subr.bf16.mxu1 %v470_v3 }
  0x56   :  { %340 = vmatpush3.bf16.msra.mxu1 %v368_v16 }
  0xc5   :  { %v62_v12 = vpop.xlane.xlu0 %61 }
  0xc6   :  { %369 = vrcp.f32 %v62_v12 }
  0xd0   :  { %v370_v13 = vpop.eup %369 }
  0xd1   :  { %v64_v14 = vmul.f32 %v370_v13, %v58_v0 }
  0xd3   :  { %v65_v15 = vpack.c.bf16 %v64_v14, %v64_v14 }
  0xd5   :  { %322 = vmatmul.mubr.msk.bf16.vlgmr.msra.gmra.mrb[0].mxu0 %vm59_vm0, %v65_v15 }
  0xd6   :  { %347 = vmatprep.mubr.msk.bf16.mxu0 %vm471_vm1, %v470_v3 }
 0x1a8   :  { %v119_v17 = vpop.f32.mrb[0].mxu0 }
 0x1a9   :  { %v125_v18 = vmax.f32 %v119_v17, 0.0  ;;  %v323_v19 = vpop.f32.mrb[1].mxu0 }
 0x1aa   :  { %v122_v20 = vpop.f32.mrb[2].mxu0 }
 0x1ab   :  { %v126_v21 = vpack.c.bf16 %v125_v18, %v125_v18  ;;  %v324_v22 = vpop.f32.mrb[3].mxu0 }
 0x1ad   :  { %342 = vmatmul.mubr.bf16.vlgmr.msra.gmra.mrb[0].mxu1 %v126_v21 }
 0x280   :  { %v225_v23 = vpop.f32.mrb[0].mxu1 }
 0x281   :  { %v231_v24 = vmax.f32 %v225_v23, 0.0  ;;  %v343_v25 = vpop.f32.mrb[1].mxu1 }
 0x282   :  { %v228_v26 = vpop.f32.mrb[2].mxu1 }
 0x283   :  { %v233_v27 = vpack.c.bf16 %v231_v24, %v231_v24  ;;  %v344_v28 = vpop.f32.mrb[3].mxu1 }
 0x285   :  { %346 = vmatpush3.bf16.xpose.msra.mxu0 %v233_v27 }
 0x28c   :  { %348 = vmatmul.mubr.bf16.vlgmr.msra.gmra.mrb[4].mxu0 %v232_v29 }
 0x35f   :  { %v268_v30 = vpop.f32.mrb[4].mxu0 }
 0x360   :  { %v349_v31 = vpop.f32.mrb[5].mxu0  ;;  %275 = vst.msk [vmem:[#allocation8] sm:$0x1] %vm274_vm2, %v268_v30 }
 0x361   :  { %v271_v32 = vpop.f32.mrb[6].mxu0 }
 0x362   :  { %448 = shalt.err (!%p445_p0)
}
 0x363   :  { %s449_s3 = scalar_lea.hbm %s564_s4, 16 }
 0x364   :  { %p450_p1 = scmp.ne.s32.totalorder %s564_s4, %s449_s3  ;;  %p453_p2 = scmp.lt.u32.totalorder %s449_s3, %s564_s4 }
 0x366   :  { %p455_p3 = pnand %p453_p2, %p450_p1 }
 0x368   :  { %458 = shalt.err (!%p455_p3)
}
 0x369   :  { %285 = dma.vmem_to_hbm [thread:$0]  %s283_s27, 16, %s564_s4, [#allocation4]   ;;  %v350_v33 = vpop.f32.mrb[7].mxu0 }
 0x36a   :  { %463 = dma.done.wait [#allocation4], 16  }
 0x36b   :  { %464 = vsyncadd [#allocation4], 4294967280 }
 0x36c   :  { %289 = vsyncpa [#allocation3], 1 }
 0x36d   :  { %290 = vsyncpa [#allocation6], 1 }
 0x36e   :  { %291 = vsyncpa [#allocation4], 1 }

</bundles_post_ra>
